<compile_context>
chip_gen: v5e
topology: v5e:2x2
jax: 0.10.0
libtpu: 0.0.40
codegen_flags: <defaults>
</compile_context>

<pallas_src>
import jax
import jax.numpy as jnp
from jax.experimental import pallas as pl
from jax.experimental.pallas import tpu as pltpu


def _make_hh_node_mp_kernel(num_type, num_head, d):
    T, H = num_type, num_head
    F = H * d
    TF = T * F
    TH = T * H

    def kernel(e_ref, w_ref, o_ref):
        # e_ref : (tile_n, T*F)  edge features, (T, H, d) flattened on lanes
        # w_ref : (tile_n, T*H)  per-head weights (tiny)
        # o_ref : (tile_n, F)    per-node output
        # TODO(synk): nn.Dropout implemented as eval-mode identity
        #             (stochastic train-mode dropout omitted).

        # Constant 0/1 expansion matrix E (T*H, T*F):
        #   E[r, c] = 1  iff  column c belongs to the d-wide feature group of
        #   weight row r, i.e. r*d <= c < (r+1)*d.
        # Built from iotas with multiply/compare only (cheap; a couple of
        # vregs, recomputed per grid step which is negligible vs the block DMA).
        row = jax.lax.broadcasted_iota(jnp.int32, (TH, TF), 0)
        col = jax.lax.broadcasted_iota(jnp.int32, (TH, TF), 1)
        lo = row * d
        expand = jnp.where((col >= lo) & (col < lo + d),
                           jnp.float32(1.0), jnp.float32(0.0))

        # Per-head weight expansion on the MXU (otherwise idle -> free).
        w = w_ref[...].astype(jnp.float32)                        # (tile_n, TH)
        w_full = jnp.dot(w, expand,
                         preferred_element_type=jnp.float32)      # (tile_n, TF)

        # One full-width weighted ReLU slab on the VPU.
        x = e_ref[...].astype(jnp.float32)                        # (tile_n, TF)
        weighted = jnp.maximum(x * w_full, 0.0)

        # Reduce over the type axis with static F-wide lane slices.
        acc = weighted[:, 0:F]
        for t in range(1, T):
            acc = acc + weighted[:, t * F:(t + 1) * F]

        o_ref[...] = acc.astype(o_ref.dtype)

    return kernel


def hh_node_mp(edge_fea, all_r_weight, *, num_node, num_type, num_head, num_fea,
               tile_n=None, vmem_limit_bytes=32 * 1024 * 1024):
    """Pallas implementation of HHNodeMP.forward (eval mode).

    edge_fea     : (num_node, num_type, num_fea)
    all_r_weight : (num_node, num_type, num_head, 1)
    returns      : (num_node, num_fea)
    """
    T, H, F = num_type, num_head, num_fea
    d = F // H
    assert H * d == F, "num_fea must be divisible by num_head"

    dtype = edge_fea.dtype
    itemsize = jnp.dtype(dtype).itemsize

    # Flatten to contiguous 2D (free reshapes; no data movement).
    e_flat = edge_fea.reshape(num_node, T * F)
    w_flat = all_r_weight.reshape(num_node, T * H).astype(dtype)

    # ---- tile selection: target ~2 MiB per edge block, rows multiple of 8 ----
    if tile_n is None:
        target_block_bytes = 2 * 1024 * 1024
        rows = max(8, target_block_bytes // (T * F * itemsize))
        rows = max(8, (int(rows) // 8) * 8)
        tile_n = min(rows, max(8, ((num_node + 7) // 8) * 8))

    # Pad N up to a tile multiple (padded rows are zero -> contribute nothing,
    # and are sliced off below).
    n_pad = ((num_node + tile_n - 1) // tile_n) * tile_n
    if n_pad != num_node:
        e_flat = jnp.pad(e_flat, ((0, n_pad - num_node), (0, 0)))
        w_flat = jnp.pad(w_flat, ((0, n_pad - num_node), (0, 0)))

    grid = (n_pad // tile_n,)
    kernel = _make_hh_node_mp_kernel(T, H, d)

    cost = pl.CostEstimate(
        flops=2 * n_pad * (T * H) * (T * F) + 3 * n_pad * T * F,
        transcendentals=0,
        bytes_accessed=(n_pad * T * F + n_pad * T * H + n_pad * F) * itemsize,
    )

    out = pl.pallas_call(
        kernel,
        out_shape=jax.ShapeDtypeStruct((n_pad, F), dtype),
        grid_spec=pltpu.PrefetchScalarGridSpec(
            num_scalar_prefetch=0,
            grid=grid,
            in_specs=[
                pl.BlockSpec((tile_n, T * F), lambda i: (i, 0)),
                pl.BlockSpec((tile_n, T * H), lambda i: (i, 0)),
            ],
            out_specs=pl.BlockSpec((tile_n, F), lambda i: (i, 0)),
        ),
        compiler_params=pltpu.CompilerParams(
            dimension_semantics=("parallel",),
            vmem_limit_bytes=vmem_limit_bytes,
        ),
        cost_estimate=cost,
    )(e_flat, w_flat)

    return out[:num_node]


def _reference(edge_fea, all_r_weight, *, num_node, num_type, num_head, num_fea):
    d = num_fea // num_head
    e = edge_fea.reshape(num_node, num_type, num_head, d)
    w = all_r_weight
    x = (w * e).reshape(num_node, num_type, num_fea)
    x = jnp.maximum(x, 0.0)  # ReLU; dropout is identity in eval mode
    return jnp.sum(x, axis=1)


if __name__ == "__main__":
    # Small shapes consistent with the module's data_stat.
    num_node, num_type, num_head, num_fea = 16, 4, 4, 32

    key = jax.random.PRNGKey(0)
    k1, k2 = jax.random.split(key)
    edge_fea = jax.random.normal(k1, (num_node, num_type, num_fea), dtype=jnp.float32)
    all_r_weight = jax.random.normal(
        k2, (num_node, num_type, num_head, 1), dtype=jnp.float32)

    out = hh_node_mp(edge_fea, all_r_weight,
                     num_node=num_node, num_type=num_type,
                     num_head=num_head, num_fea=num_fea)
    out = jax.block_until_ready(out)

    ref = _reference(edge_fea, all_r_weight,
                     num_node=num_node, num_type=num_type,
                     num_head=num_head, num_fea=num_fea)

    assert out.shape == (num_node, num_fea)
    assert jnp.allclose(out, ref, atol=1e-5, rtol=1e-5), "mismatch vs reference"
    print("KERNEL_OK")
</pallas_src>

<mosaic_0001>
module attributes {stable_mosaic.version = 11 : i64} {
  func.func @kernel(%arg0: i32, %arg1: memref<16x128xf32, #tpu.memory_space<vmem>>, %arg2: memref<16x16xf32, #tpu.memory_space<vmem>>, %arg3: memref<16x32xf32, #tpu.memory_space<vmem>>) attributes {dimension_semantics = [#tpu.dimension_semantics<parallel>], iteration_bounds = array<i64: 1>, scalar_prefetch = 0 : i64, scratch_operands = 0 : i64, tpu.core_type = #tpu.core_type<tc>, window_params = [{transform_indices = @transform_0, window_bounds = array<i64: 16, 128>}, {transform_indices = @transform_1, window_bounds = array<i64: 16, 16>}, {transform_indices = @transform_2, window_bounds = array<i64: 16, 32>}]} {
    %0 = tpu.iota {dimensions = array<i32: 0>} : vector<16x128xi32>
    %1 = tpu.iota {dimensions = array<i32: 1>} : vector<16x128xi32>
    %c8_i32 = arith.constant 8 : i32
    %2 = vector.broadcast %c8_i32 : i32 to vector<16x128xi32>
    %3 = arith.muli %0, %2 : vector<16x128xi32>
    %4 = arith.cmpi sge, %1, %3 : vector<16x128xi32>
    %c8_i32_0 = arith.constant 8 : i32
    %5 = vector.broadcast %c8_i32_0 : i32 to vector<16x128xi32>
    %6 = arith.addi %3, %5 : vector<16x128xi32>
    %7 = arith.cmpi slt, %1, %6 : vector<16x128xi32>
    %8 = arith.andi %4, %7 : vector<16x128xi1>
    %cst = arith.constant 1.000000e+00 : f32
    %cst_1 = arith.constant 0.000000e+00 : f32
    %9 = vector.broadcast %cst : f32 to vector<16x128xf32>
    %10 = vector.broadcast %cst_1 : f32 to vector<16x128xf32>
    %11 = arith.select %8, %9, %10 : vector<16x128xi1>, vector<16x128xf32>
    %c0 = arith.constant 0 : index
    %c0_2 = arith.constant 0 : index
    %12 = vector.load %arg2[%c0, %c0_2] : memref<16x16xf32, #tpu.memory_space<vmem>>, vector<16x16xf32>
    %cst_3 = arith.constant dense<0.000000e+00> : vector<16x128xf32>
    %13 = tpu.matmul %12, %11, %cst_3 {dimension_numbers = #tpu.dot_dimension_numbers<[1], [0], [0], [1], [0, 0, 1, 1], [], []>} : vector<16x16xf32>, vector<16x128xf32>, vector<16x128xf32> -> vector<16x128xf32>
    %c0_4 = arith.constant 0 : index
    %c0_5 = arith.constant 0 : index
    %14 = vector.load %arg1[%c0_4, %c0_5] : memref<16x128xf32, #tpu.memory_space<vmem>>, vector<16x128xf32>
    %15 = arith.mulf %14, %13 : vector<16x128xf32>
    %cst_6 = arith.constant 0.000000e+00 : f32
    %16 = vector.broadcast %cst_6 : f32 to vector<16x128xf32>
    %17 = arith.maximumf %15, %16 : vector<16x128xf32>
    %18 = vector.extract_strided_slice %17 {offsets = [0, 0], sizes = [16, 32], strides = [1, 1]} : vector<16x128xf32> to vector<16x32xf32>
    %19 = vector.extract_strided_slice %17 {offsets = [0, 32], sizes = [16, 32], strides = [1, 1]} : vector<16x128xf32> to vector<16x32xf32>
    %20 = arith.addf %18, %19 : vector<16x32xf32>
    %21 = vector.extract_strided_slice %17 {offsets = [0, 64], sizes = [16, 32], strides = [1, 1]} : vector<16x128xf32> to vector<16x32xf32>
    %22 = arith.addf %20, %21 : vector<16x32xf32>
    %23 = vector.extract_strided_slice %17 {offsets = [0, 96], sizes = [16, 32], strides = [1, 1]} : vector<16x128xf32> to vector<16x32xf32>
    %24 = arith.addf %22, %23 : vector<16x32xf32>
    %c0_7 = arith.constant 0 : index
    %c0_8 = arith.constant 0 : index
    %25 = vector.load %arg3[%c0_7, %c0_8] : memref<16x32xf32, #tpu.memory_space<vmem>>, vector<16x32xf32>
    tpu.vector_store %arg3[%c0_7, %c0_8], %24 {strides = array<i32>} : memref<16x32xf32, #tpu.memory_space<vmem>>, vector<16x32xf32>,
    return
  }
  func.func @transform_0(%arg0: i32) -> (i32, i32) {
    %c0_i32 = arith.constant 0 : i32
    %c0_i32_0 = arith.constant 0 : i32
    return %arg0, %c0_i32 : i32, i32
  }
  func.func @transform_1(%arg0: i32) -> (i32, i32) {
    %c0_i32 = arith.constant 0 : i32
    %c0_i32_0 = arith.constant 0 : i32
    return %arg0, %c0_i32 : i32, i32
  }
  func.func @transform_2(%arg0: i32) -> (i32, i32) {
    %c0_i32 = arith.constant 0 : i32
    %c0_i32_0 = arith.constant 0 : i32
    return %arg0, %c0_i32 : i32, i32
  }
}

</mosaic_0001>

<bundles_post_ra>
// kernel: tpu_custom_call.1
= control target key start
LH: loop header
LB: loop body
LE: loop exit
PB: predicated region body
PF: predicated region fallthrough
CT: control target
= control target key end

     0   :  { %7 = vsyncpa [#allocation3], 0  ;;  %s283_s0 = inlined_call_operand.hbm [shape: f32[16,128], index: 0, kind: input, shape index: {}]   ;;  %s284_s1 = inlined_call_operand.hbm [shape: f32[16,16], index: 1, kind: input, shape index: {}]   ;;  %s285_s2 = inlined_call_operand.hbm [shape: f32[16,32], index: 2, kind: output, shape index: {}]  }
   0x1   :  { %8 = vsyncpa [#allocation6], 0 }
   0x2   :  { %9 = vsyncpa [#allocation4], 0  ;;  %s14_s11 = sshll.u32 %s283_s0, 4  ;;  %s241_s12 = smov [#allocation2]   ;;  %s15_s11 = int_to_ptr.hbm [resolvable:$true] %s14_s11 }
   0x3   :  { %s16_s13 = sshll.u32 %s241_s12, 4  ;;  %s27_s16 = sshll.u32 %s284_s1, 4  ;;  %s17_s13 = int_to_ptr.vmem [resolvable:$true] %s16_s13  ;;  %s28_s16 = int_to_ptr.hbm [resolvable:$true] %s27_s16 }
   0x4   :  { %s242_s17 = smov 128   ;;  %s243_s18 = smov 8  }
   0x5   :  { %22 = dma.hbm_to_vmem [thread:$0]  %s15_s11, 256, %s17_s13, [#allocation3], %s242_s17, %s242_s17, %s243_s18  }
   0x6   :  { %s244_s19 = smov [#allocation5]  }
   0x7   :  { %s29_s20 = sshll.u32 %s244_s19, 4  ;;  %s30_s20 = int_to_ptr.vmem [resolvable:$true] %s29_s20 }
   0x8   :  { %35 = dma.hbm_to_vmem [thread:$0]  %s28_s16, 256, %s30_s20, [#allocation6], %s242_s17, %s242_s17, %s243_s18  }
   0x9   :  { %235 = dma.done.wait [#allocation3], 256  }
   0xa   :  { %236 = vsyncadd [#allocation3], 4294967040 }
   0xb   :  { %237 = dma.done.wait [#allocation6], 256  }
   0xc   :  { %238 = vsyncadd [#allocation6], 4294967040  ;;  %v44_v0 = vlaneseq  ;;  %v245_v8 = vmov 1.0   ;;  %v61_v9 = vld [vmem:[#allocation5] sm:$0xff]  ;;  %vm63_vm6 = vcmask 130048   ;;  %v62_v10 = vld [vmem:[#allocation5 + $0x8] sm:$0xff] }
   0xd   :  { %v93_v11 = vld [vmem:[#allocation2] sm:$0xff]  ;;  %v94_v15 = vld [vmem:[#allocation2 + $0x8] sm:$0xff]  ;;  %s246_s0 = smov 32   ;;  %s247_s1 = smov 64   ;;  %vm125_vm7 = vcmask 261120  }
   0xe   :  { %v45_v1 = vshrl.u32 %v44_v0, 7  ;;  %v48_v3 = vand.u32 127, %v44_v0  ;;  %s248_s21 = smov 96   ;;  %s249_s22 = smov [#allocation7]  }
   0xf   :  { %s132_s23 = sshll.u32 %s249_s22, 4  ;;  %s134_s26 = sshll.u32 %s285_s2, 4  ;;  %s133_s23 = int_to_ptr.vmem [resolvable:$true] %s132_s23  ;;  %s135_s26 = int_to_ptr.hbm [resolvable:$true] %s134_s26 }
  0x10   :  { %v46_v2 = vadd.s32 8, %v45_v1  ;;  %v49_v4 = vmul.u32 8, %v45_v1 }
  0x12   :  { %v50_v5 = vmul.u32 8, %v46_v2  ;;  %v53_v6 = vadd.s32 8, %v49_v4  ;;  %vm51_vm0 = vcmp.ge.s32.totalorder %v48_v3, %v49_v4 }
  0x14   :  { %vm52_vm1 = vcmp.ge.s32.totalorder %v48_v3, %v50_v5  ;;  %v54_v7 = vadd.s32 8, %v50_v5  ;;  %vm55_vm2 = vcmp.lt.s32.totalorder %v48_v3, %v53_v6 }
  0x15   :  { %vm57_vm4 = vmand %vm51_vm0, %vm55_vm2 }
  0x16   :  { %vm56_vm3 = vcmp.lt.s32.totalorder %v48_v3, %v54_v7 }
  0x17   :  { %vm58_vm5 = vmand %vm52_vm1, %vm56_vm3 }
  0x18   :  { %148 = vmatpush.msk.msra.mxu0 %vm58_vm5, %v245_v8  ;;  %152 = vmatpush.msk.msra.mxu1 %vm58_vm5, %v245_v8 }
  0x1a   :  { %149 = vmatpush.msk.msra.mxu0 %vm57_vm4, %v245_v8  ;;  %153 = vmatpush.msk.msra.mxu1 %vm57_vm4, %v245_v8 }
  0x1b   :  { %150 = vmatmul.msk.f32.vlgmr.msra.gmra.mxu0 %vm63_vm6, %v61_v9  ;;  %151 = vmatmul.msk.f32.vlgmr.msra.gmra.mxu1 %vm63_vm6, %v62_v10 }
  0x98   :  { %v87_v12 = vpop.f32.mrf.mxu0  ;;  %v90_v14 = vpop.f32.mrf.mxu1 }
  0x99   :  { %v95_v13 = vmul.f32 %v93_v11, %v87_v12  ;;  %v96_v17 = vmul.f32 %v94_v15, %v90_v14 }
  0x9b   :  { %v97_v16 = vmax.f32 %v95_v13, 0.0  ;;  %v98_v18 = vmax.f32 %v96_v17, 0.0 }
  0x9d   :  { %117 = vrot.lane.b32.xlu2 %v97_v16, %s246_s0  ;;  %109 = vrot.lane.b32.xlu1 %v97_v16, %s247_s1 }
  0x9e   :  { %101 = vrot.lane.b32.xlu0 %v97_v16, %s248_s21 }
  0xa5   :  { %119 = vrot.lane.b32.xlu2 %v98_v18, %s246_s0  ;;  %111 = vrot.lane.b32.xlu1 %v98_v18, %s247_s1 }
  0xa6   :  { %103 = vrot.lane.b32.xlu0 %v98_v18, %s248_s21 }
  0xf7   :  { %v118_v22 = vpop.permute.xlu2 %117 }
  0xff   :  { %v120_v29 = vpop.permute.xlu2 %119 }
 0x10f   :  { %v110_v19 = vpop.permute.xlu1 %109 }
 0x110   :  { %v102_v20 = vpop.permute.xlu0 %101 }
 0x111   :  { %v107_v21 = vadd.f32 %v102_v20, %v97_v16 }
 0x113   :  { %v115_v23 = vadd.f32 %v110_v19, %v107_v21 }
 0x115   :  { %v123_v24 = vadd.f32 %v118_v22, %v115_v23 }
 0x117   :  { %126 = vst.msk [vmem:[#allocation7] sm:$0xff] %vm125_vm7, %v123_v24  ;;  %v112_v27 = vpop.permute.xlu1 %111 }
 0x118   :  { %v104_v25 = vpop.permute.xlu0 %103 }
 0x119   :  { %v108_v26 = vadd.f32 %v104_v25, %v98_v18 }
 0x11b   :  { %v116_v28 = vadd.f32 %v112_v27, %v108_v26 }
 0x11d   :  { %v124_v30 = vadd.f32 %v120_v29, %v116_v28 }
 0x11f   :  { %127 = vst.msk [vmem:[#allocation7 + $0x8] sm:$0xff] %vm125_vm7, %v124_v30 }
 0x120   :  { %140 = dma.vmem_to_hbm [thread:$0]  %s133_s23, 256, %s135_s26, [#allocation4], %s242_s17, %s242_s17, %s243_s18  }
 0x121   :  { %239 = dma.done.wait [#allocation4], 256  }
 0x122   :  { %240 = vsyncadd [#allocation4], 4294967040 }
 0x123   :  { %145 = vsyncpa [#allocation3], 1 }
 0x124   :  { %146 = vsyncpa [#allocation6], 1 }
 0x125   :  { %147 = vsyncpa [#allocation4], 1 }

</bundles_post_ra>
